<compile_context>
chip_gen: v7x
topology: tpu7x:2x2x1
jax: 0.10.0
libtpu: 0.0.40
codegen_flags: <defaults>
</compile_context>

<pallas_src>
import functools

import jax
import jax.numpy as jnp
from jax import lax
from jax.experimental import pallas as pl
from jax.experimental.pallas import tpu as pltpu


def _round_up(x, m):
    return (x + m - 1) // m * m


def _supcon_tile_kernel(qf_ref, kf_ref, labq_ref, labk_ref,
                        loss_ref, single_ref, *,
                        inv_temp, tq, b_pad, b_actual, compute_dtype):
    # qf_ref:   (TQ, D)     anchor-feature tile (original dtype)
    # kf_ref:   (B_pad, D)  full (zero-padded) features, resident across grid
    # labq_ref: (TQ, 1)     int32 labels for this tile (column vector)
    # labk_ref: (1, B_pad)  int32 labels for all samples (row vector)
    # loss_ref, single_ref: (1, 1, 1) per-tile partial outputs (f32)
    tile = pl.program_id(0)

    # Fold 1/temperature into the small q operand; feed the MXU in bf16.
    q = (qf_ref[...].astype(jnp.float32) * inv_temp).astype(compute_dtype)
    k = kf_ref[...].astype(compute_dtype)

    # (TQ, B_pad) similarity on the MXU with f32 accumulation.
    sim = lax.dot_general(
        q, k,
        dimension_numbers=(((1,), (1,)), ((), ())),
        preferred_element_type=jnp.float32,
    )

    # Numerical-stability shift (detach() is a no-op in the forward pass).
    # Zero-padded columns contribute sim==0 <= diagonal ||f||^2/T, so the max
    # is identical to the unpadded computation.
    logits_max = jnp.max(sim, axis=1, keepdims=True)
    logits = sim - logits_max

    # keep = "this column participates": not self-contrast, and not padding.
    row_g = tile * tq + lax.broadcasted_iota(jnp.int32, (tq, b_pad), 0)
    col_g = lax.broadcasted_iota(jnp.int32, (tq, b_pad), 1)
    keep = row_g != col_g
    if b_pad != b_actual:
        keep = jnp.logical_and(keep, col_g < b_actual)

    # Positive-pair mask: same label, self/padding excluded.
    label_eq = labq_ref[...] == labk_ref[...]            # (TQ,1)==(1,B_pad)
    pos = jnp.logical_and(label_eq, keep)

    # Denominator of the log-softmax over valid, non-self columns.
    e = jnp.exp(logits)
    sum_exp = jnp.sum(jnp.where(keep, e, 0.0), axis=1, keepdims=True)
    lse = jnp.log(sum_exp)                               # (TQ, 1)

    one = jnp.float32(1.0)
    zero = jnp.float32(0.0)
    mask_sum = jnp.sum(jnp.where(pos, one, zero), axis=1, keepdims=True)
    sum_pos_logits = jnp.sum(jnp.where(pos, logits, zero), axis=1,
                             keepdims=True)

    single = (mask_sum == 0.0).astype(jnp.float32)       # (TQ, 1)
    # sum(mask * log_prob) == sum(mask * logits) - mask_sum * lse
    mean_log_prob_pos = (sum_pos_logits - mask_sum * lse) / (mask_sum + single)
    loss_rows = -mean_log_prob_pos * (one - single)

    if b_pad != b_actual:
        row_valid = (tile * tq
                     + lax.broadcasted_iota(jnp.int32, (tq, 1), 0)) < b_actual
        loss_rows = jnp.where(row_valid, loss_rows, zero)
        single = jnp.where(row_valid, single, zero)

    loss_ref[...] = jnp.reshape(jnp.sum(loss_rows), (1, 1, 1))
    single_ref[...] = jnp.reshape(jnp.sum(single), (1, 1, 1))


def supervised_contrastive_loss(features, labels, temperature=0.07, *,
                                block_q=256, use_bf16_matmul=True):
    """features: (B, D) float, labels: (B,) int -> scalar float32 loss."""
    B, D = features.shape
    labels = labels.astype(jnp.int32)

    block_q = max(8, int(block_q) // 8 * 8)
    tq = min(_round_up(B, 8), block_q)          # row-tile size (multiple of 8)
    b_pad = _round_up(B, tq)
    g = b_pad // tq

    if b_pad != B:
        feats = jnp.pad(features, ((0, b_pad - B), (0, 0)))
        labs = jnp.pad(labels, (0, b_pad - B))
    else:
        feats, labs = features, labels

    lab_col = labs.reshape(b_pad, 1)
    lab_row = labs.reshape(1, b_pad)

    compute_dtype = jnp.bfloat16 if use_bf16_matmul else jnp.float32
    itemsize = jnp.dtype(features.dtype).itemsize

    kernel = functools.partial(
        _supcon_tile_kernel,
        inv_temp=1.0 / float(temperature),
        tq=tq, b_pad=b_pad, b_actual=B,
        compute_dtype=compute_dtype,
    )

    # Scoped-VMEM request sized to the tile (double-buffered q input, resident
    # key slab, and the (TQ, B_pad) working slabs), clamped to physical VMEM.
    vmem_est = (2 * (tq * D * itemsize + tq * 4)
                + 2 * (b_pad * D * itemsize + b_pad * 4)
                + 6 * tq * b_pad * 4 + (2 << 20))
    vmem_limit = int(min(max(vmem_est, 16 << 20), 64 << 20))

    loss_parts, single_parts = pl.pallas_call(
        kernel,
        out_shape=(jax.ShapeDtypeStruct((g, 1, 1), jnp.float32),
                   jax.ShapeDtypeStruct((g, 1, 1), jnp.float32)),
        grid_spec=pl.GridSpec(
            grid=(g,),
            in_specs=[
                pl.BlockSpec((tq, D), lambda i: (i, 0)),      # q feature tile
                pl.BlockSpec((b_pad, D), lambda i: (0, 0)),   # full features
                pl.BlockSpec((tq, 1), lambda i: (i, 0)),      # tile labels
                pl.BlockSpec((1, b_pad), lambda i: (0, 0)),   # all labels
            ],
            out_specs=(
                pl.BlockSpec((1, 1, 1), lambda i: (i, 0, 0)),
                pl.BlockSpec((1, 1, 1), lambda i: (i, 0, 0)),
            ),
        ),
        compiler_params=pltpu.CompilerParams(
            dimension_semantics=("parallel",),
            vmem_limit_bytes=vmem_limit,
        ),
        cost_estimate=pl.CostEstimate(
            flops=int(2 * b_pad * b_pad * D),
            transcendentals=int(b_pad * b_pad),
            bytes_accessed=int(2 * b_pad * D * itemsize + 8 * b_pad + 8 * g),
        ),
    )(feats, feats, lab_col, lab_row)

    # Final tiny reduction + division in the wrapper (keeps the grid parallel).
    # Note: if every label is unique this is 0/0 -> NaN, exactly matching the
    # PyTorch reference behaviour.
    denom = jnp.float32(B) - jnp.sum(single_parts)
    return jnp.sum(loss_parts) / denom


def _reference_loss_from_sim(sim, labels, B):
    """Pure-JAX reference given a precomputed anchor_dot_contrast matrix."""
    logits = sim - jnp.max(sim, axis=1, keepdims=True)
    logits_mask = 1.0 - jnp.eye(B, dtype=jnp.float32)
    lab = labels.reshape(-1, 1)
    mask = (lab == lab.T).astype(jnp.float32) * logits_mask
    single = (mask.sum(1) == 0).astype(jnp.float32)
    exp_logits = jnp.exp(logits) * logits_mask
    log_prob = logits - jnp.log(exp_logits.sum(1, keepdims=True))
    mlpp = (mask * log_prob).sum(1) / (mask.sum(1) + single)
    return (-mlpp * (1 - single)).sum() / (B - single.sum())


if __name__ == "__main__":
    key = jax.random.PRNGKey(0)
    kf, kl = jax.random.split(key)

    B, D = 8, 32
    temperature = 0.07
    features = jax.random.normal(kf, (B, D), dtype=jnp.float32)
    # L2-normalize (typical SupCon usage); not required for correctness.
    features = features / jnp.linalg.norm(features, axis=1, keepdims=True)
    labels = jax.random.randint(kl, (B,), 0, 3, dtype=jnp.int32)

    loss = supervised_contrastive_loss(features, labels, temperature)
    jax.block_until_ready(loss)

    # Reference 1: same math with the same bf16 MXU inputs (tight tolerance).
    inv_t = 1.0 / temperature
    qb = (features * inv_t).astype(jnp.bfloat16)
    kb = features.astype(jnp.bfloat16)
    sim_bf16 = lax.dot_general(qb, kb,
                               dimension_numbers=(((1,), (1,)), ((), ())),
                               preferred_element_type=jnp.float32)
    ref_bf16 = _reference_loss_from_sim(sim_bf16, labels, B)

    # Reference 2: full-f32 PyTorch-equivalent math (loose tolerance for the
    # bf16 matmul inputs).
    sim_f32 = (features @ features.T) / temperature
    ref_f32 = _reference_loss_from_sim(sim_f32, labels, B)

    assert jnp.allclose(loss, ref_bf16, rtol=1e-3, atol=1e-3), (loss, ref_bf16)
    assert jnp.allclose(loss, ref_f32, rtol=5e-2, atol=5e-2), (loss, ref_f32)
    print("KERNEL_OK")
</pallas_src>

<mosaic_0001>
module attributes {stable_mosaic.version = 11 : i64} {
  func.func @_supcon_tile_kernel(%arg0: i32, %arg1: memref<8x32xf32, #tpu.memory_space<vmem>>, %arg2: memref<8x32xf32, #tpu.memory_space<vmem>>, %arg3: memref<8x1xi32, #tpu.memory_space<vmem>>, %arg4: memref<1x8xi32, #tpu.memory_space<vmem>>, %arg5: memref<1x1x1xf32, #tpu.memory_space<vmem>>, %arg6: memref<1x1x1xf32, #tpu.memory_space<vmem>>) attributes {dimension_semantics = [#tpu.dimension_semantics<parallel>], iteration_bounds = array<i64: 1>, scalar_prefetch = 0 : i64, scratch_operands = 0 : i64, tpu.core_type = #tpu.core_type<tc>, window_params = [{transform_indices = @transform_0, window_bounds = array<i64: 8, 32>}, {pipeline_mode = #tpu.pipeline_mode<synchronous>, transform_indices = @transform_1, window_bounds = array<i64: 8, 32>}, {transform_indices = @transform_2, window_bounds = array<i64: 8, 1>}, {pipeline_mode = #tpu.pipeline_mode<synchronous>, transform_indices = @transform_3, window_bounds = array<i64: 1, 8>}, {transform_indices = @transform_4, window_bounds = array<i64: 1, 1, 1>}, {transform_indices = @transform_5, window_bounds = array<i64: 1, 1, 1>}]} {
    %c0 = arith.constant 0 : index
    %c0_0 = arith.constant 0 : index
    %0 = vector.load %arg1[%c0, %c0_0] : memref<8x32xf32, #tpu.memory_space<vmem>>, vector<8x32xf32>
    %cst = arith.constant 14.2857141 : f32
    %1 = vector.broadcast %cst : f32 to vector<8x32xf32>
    %2 = arith.mulf %0, %1 : vector<8x32xf32>
    %3 = arith.truncf %2 : vector<8x32xf32> to vector<8x32xbf16>
    %c0_1 = arith.constant 0 : index
    %c0_2 = arith.constant 0 : index
    %4 = vector.load %arg2[%c0_1, %c0_2] : memref<8x32xf32, #tpu.memory_space<vmem>>, vector<8x32xf32>
    %5 = arith.truncf %4 : vector<8x32xf32> to vector<8x32xbf16>
    %cst_3 = arith.constant dense<0.000000e+00> : vector<8x8xf32>
    %6 = tpu.matmul %3, %5, %cst_3 {dimension_numbers = #tpu.dot_dimension_numbers<[1], [1], [0], [0], [0, 0, 1, 0], [], []>} : vector<8x32xbf16>, vector<8x32xbf16>, vector<8x8xf32> -> vector<8x8xf32>
    %cst_4 = arith.constant dense<0xFF800000> : vector<8xf32>
    %7 = vector.multi_reduction <maximumf>, %6, %cst_4 [1] : vector<8x8xf32> to vector<8xf32>
    %8 = vector.shape_cast %7 : vector<8xf32> to vector<8x1xf32>
    %9 = vector.broadcast %8 : vector<8x1xf32> to vector<8x8xf32>
    %10 = arith.subf %6, %9 : vector<8x8xf32>
    %c8_i32 = arith.constant 8 : i32
    %11 = arith.muli %arg0, %c8_i32 : i32
    %12 = tpu.iota {dimensions = array<i32: 0>} : vector<8x8xi32>
    %13 = vector.broadcast %11 : i32 to vector<8x8xi32>
    %14 = arith.addi %13, %12 : vector<8x8xi32>
    %15 = tpu.iota {dimensions = array<i32: 1>} : vector<8x8xi32>
    %16 = arith.cmpi ne, %14, %15 : vector<8x8xi32>
    %c0_5 = arith.constant 0 : index
    %c0_6 = arith.constant 0 : index
    %17 = vector.load %arg3[%c0_5, %c0_6] : memref<8x1xi32, #tpu.memory_space<vmem>>, vector<8x1xi32>
    %c0_7 = arith.constant 0 : index
    %c0_8 = arith.constant 0 : index
    %18 = vector.load %arg4[%c0_7, %c0_8] : memref<1x8xi32, #tpu.memory_space<vmem>>, vector<1x8xi32>
    %19 = vector.broadcast %17 : vector<8x1xi32> to vector<8x8xi32>
    %20 = vector.broadcast %18 : vector<1x8xi32> to vector<8x8xi32>
    %21 = arith.cmpi eq, %19, %20 : vector<8x8xi32>
    %22 = arith.andi %21, %16 : vector<8x8xi1>
    %23 = math.exp %10 : vector<8x8xf32>
    %cst_9 = arith.constant 0.000000e+00 : f32
    %24 = vector.broadcast %cst_9 : f32 to vector<8x8xf32>
    %25 = arith.select %16, %23, %24 : vector<8x8xi1>, vector<8x8xf32>
    %cst_10 = arith.constant dense<0.000000e+00> : vector<8xf32>
    %26 = vector.multi_reduction <add>, %25, %cst_10 [1] : vector<8x8xf32> to vector<8xf32>
    %27 = vector.shape_cast %26 : vector<8xf32> to vector<8x1xf32>
    %28 = math.log %27 : vector<8x1xf32>
    %cst_11 = arith.constant 1.000000e+00 : f32
    %cst_12 = arith.constant 0.000000e+00 : f32
    %29 = vector.broadcast %cst_11 : f32 to vector<8x8xf32>
    %30 = vector.broadcast %cst_12 : f32 to vector<8x8xf32>
    %31 = arith.select %22, %29, %30 : vector<8x8xi1>, vector<8x8xf32>
    %cst_13 = arith.constant dense<0.000000e+00> : vector<8xf32>
    %32 = vector.multi_reduction <add>, %31, %cst_13 [1] : vector<8x8xf32> to vector<8xf32>
    %33 = vector.shape_cast %32 : vector<8xf32> to vector<8x1xf32>
    %cst_14 = arith.constant 0.000000e+00 : f32
    %34 = vector.broadcast %cst_14 : f32 to vector<8x8xf32>
    %35 = arith.select %22, %10, %34 : vector<8x8xi1>, vector<8x8xf32>
    %cst_15 = arith.constant dense<0.000000e+00> : vector<8xf32>
    %36 = vector.multi_reduction <add>, %35, %cst_15 [1] : vector<8x8xf32> to vector<8xf32>
    %37 = vector.shape_cast %36 : vector<8xf32> to vector<8x1xf32>
    %cst_16 = arith.constant 0.000000e+00 : f32
    %38 = vector.broadcast %cst_16 : f32 to vector<8x1xf32>
    %39 = arith.cmpf oeq, %33, %38 : vector<8x1xf32>
    %40 = arith.extui %39 : vector<8x1xi1> to vector<8x1xi32>
    %41 = arith.sitofp %40 : vector<8x1xi32> to vector<8x1xf32>
    %42 = arith.mulf %33, %28 : vector<8x1xf32>
    %43 = arith.subf %37, %42 : vector<8x1xf32>
    %44 = arith.addf %33, %41 : vector<8x1xf32>
    %45 = arith.divf %43, %44 : vector<8x1xf32>
    %cst_17 = arith.constant 0.000000e+00 : f32
    %46 = vector.broadcast %cst_17 : f32 to vector<8x1xf32>
    %47 = arith.subf %46, %45 : vector<8x1xf32>
    %cst_18 = arith.constant 1.000000e+00 : f32
    %48 = vector.broadcast %cst_18 : f32 to vector<8x1xf32>
    %49 = arith.subf %48, %41 : vector<8x1xf32>
    %50 = arith.mulf %47, %49 : vector<8x1xf32>
    %51 = vector.shape_cast %50 : vector<8x1xf32> to vector<1x8x1xf32>
    %cst_19 = arith.constant dense<0.000000e+00> : vector<1xf32>
    %52 = vector.multi_reduction <add>, %51, %cst_19 [1, 2] : vector<1x8x1xf32> to vector<1xf32>
    %53 = vector.shape_cast %52 : vector<1xf32> to vector<1x1x1xf32>
    %54 = vector.extract %53[0, 0, 0] : f32 from vector<1x1x1xf32>
    %55 = vector.broadcast %54 : f32 to vector<1x1x1xf32>
    %c0_20 = arith.constant 0 : index
    %c0_21 = arith.constant 0 : index
    %c0_22 = arith.constant 0 : index
    %56 = vector.load %arg5[%c0_20, %c0_21, %c0_22] : memref<1x1x1xf32, #tpu.memory_space<vmem>>, vector<1x1x1xf32>
    tpu.vector_store %arg5[%c0_20, %c0_21, %c0_22], %55 {strides = array<i32>} : memref<1x1x1xf32, #tpu.memory_space<vmem>>, vector<1x1x1xf32>,
    %57 = vector.shape_cast %41 : vector<8x1xf32> to vector<1x8x1xf32>
    %cst_23 = arith.constant dense<0.000000e+00> : vector<1xf32>
    %58 = vector.multi_reduction <add>, %57, %cst_23 [1, 2] : vector<1x8x1xf32> to vector<1xf32>
    %59 = vector.shape_cast %58 : vector<1xf32> to vector<1x1x1xf32>
    %60 = vector.extract %59[0, 0, 0] : f32 from vector<1x1x1xf32>
    %61 = vector.broadcast %60 : f32 to vector<1x1x1xf32>
    %c0_24 = arith.constant 0 : index
    %c0_25 = arith.constant 0 : index
    %c0_26 = arith.constant 0 : index
    %62 = vector.load %arg6[%c0_24, %c0_25, %c0_26] : memref<1x1x1xf32, #tpu.memory_space<vmem>>, vector<1x1x1xf32>
    tpu.vector_store %arg6[%c0_24, %c0_25, %c0_26], %61 {strides = array<i32>} : memref<1x1x1xf32, #tpu.memory_space<vmem>>, vector<1x1x1xf32>,
    return
  }
  func.func @transform_0(%arg0: i32) -> (i32, i32) {
    %c0_i32 = arith.constant 0 : i32
    %c0_i32_0 = arith.constant 0 : i32
    return %arg0, %c0_i32 : i32, i32
  }
  func.func @transform_1(%arg0: i32) -> (i32, i32) {
    %c0_i32 = arith.constant 0 : i32
    %c0_i32_0 = arith.constant 0 : i32
    %c0_i32_1 = arith.constant 0 : i32
    return %c0_i32, %c0_i32_0 : i32, i32
  }
  func.func @transform_2(%arg0: i32) -> (i32, i32) {
    %c0_i32 = arith.constant 0 : i32
    %c0_i32_0 = arith.constant 0 : i32
    return %arg0, %c0_i32 : i32, i32
  }
  func.func @transform_3(%arg0: i32) -> (i32, i32) {
    %c0_i32 = arith.constant 0 : i32
    %c0_i32_0 = arith.constant 0 : i32
    %c0_i32_1 = arith.constant 0 : i32
    return %c0_i32, %c0_i32_0 : i32, i32
  }
  func.func @transform_4(%arg0: i32) -> (i32, i32, i32) {
    %c0_i32 = arith.constant 0 : i32
    %c0_i32_0 = arith.constant 0 : i32
    %c0_i32_1 = arith.constant 0 : i32
    return %arg0, %c0_i32, %c0_i32_0 : i32, i32, i32
  }
  func.func @transform_5(%arg0: i32) -> (i32, i32, i32) {
    %c0_i32 = arith.constant 0 : i32
    %c0_i32_0 = arith.constant 0 : i32
    %c0_i32_1 = arith.constant 0 : i32
    return %arg0, %c0_i32, %c0_i32_0 : i32, i32, i32
  }
}

</mosaic_0001>

<bundles_post_ra>
// kernel: tpu_custom_call.1
= control target key start
LH: loop header
LB: loop body
LE: loop exit
PB: predicated region body
PF: predicated region fallthrough
CT: control target
= control target key end

     0   :  { %11 = vsyncpa [#allocation3], 0  ;;  %s379_s0 = inlined_call_operand.vmem [shape: f32[8,32], index: 0, kind: input, shape index: {}]   ;;  %s380_s1 = inlined_call_operand.hbm [shape: f32[8,32], index: 1, kind: input, shape index: {}]   ;;  %s381_s2 = inlined_call_operand.vmem [shape: s32[8,1], index: 2, kind: input, shape index: {}]   ;;  %s382_s3 = inlined_call_operand.vmem [shape: s32[1,8], index: 3, kind: input, shape index: {}]   ;;  %s383_s4 = inlined_call_operand.hbm [shape: f32[1,1,1], index: 4, kind: output, shape index: {0}]   ;;  %s384_s5 = inlined_call_operand.hbm [shape: f32[1,1,1], index: 5, kind: output, shape index: {1}]  }
   0x1   :  { %12 = vsyncpa [#allocation4], 0 }
   0x2   :  { %13 = vsyncpa [#allocation7], 0  ;;  %s292_s18 = smov [#allocation2]   ;;  %s220_s22 = scalar_lea.hbm %s380_s1, 128 }
   0x3   :  { %s22_s19 = sshll.u32 %s292_s18, 4  ;;  %p221_p0 = scmp.ne.s32.totalorder %s380_s1, %s220_s22  ;;  %s23_s19 = int_to_ptr.vmem [resolvable:$true] %s22_s19 }
   0x4   :  { %p224_p1 = scmp.lt.u32.totalorder %s220_s22, %s380_s1 }
   0x6   :  { %p226_p2 = pnand %p224_p1, %p221_p0 }
   0x8   :  { %229 = shalt.err (!%p226_p2)
}
   0x9   :  { %s230_s27 = scalar_lea.vmem %s23_s19, 128  ;;  %p235_p4 = scmp.lt.s32.totalorder %s23_s19, %s23_s19 }
   0xa   :  { %p231_p3 = scmp.ne.s32.totalorder %s23_s19, %s230_s27  ;;  %p236_p5 = scmp.lt.s32.totalorder %s230_s27, %s230_s27 }
   0xc   :  { %p237_p6 = por %p236_p5, %p235_p4 }
   0xe   :  { %p238_p7 = pnand %p237_p6, %p231_p3 }
  0x10   :  { %241 = shalt.err (!%p238_p7)
}
  0x11   :  { %25 = dma.hbm_to_vmem [thread:$0]  %s380_s1, 128, %s23_s19, [#allocation3]  }
  0x12   :  { %286 = dma.done.wait [#allocation3], 128  }
  0x13   :  { %287 = vsyncadd [#allocation3], 4294967168  ;;  %v293_v0 = vmov 0.0   ;;  %vm294_vm0 = vmmov 0   ;;  %v37_v1 = vld [vmem:[#allocation2] sm:$0xff]  ;;  %vm39_vm1 = vcmask 261120   ;;  %v92_v17 = vlaneseq }
  0x14   :  { %197 = vmatprep.subr.bf16.mxu0 %v293_v0  ;;  %199 = vmatprep.mubr.msk.bf16.mxu0 %vm294_vm0, %v293_v0  ;;  %v34_v2 = vld [vmem:[%s379_s0] sm:$0xff]  ;;  %v38_v3 = vpack.c.bf16 %v37_v1, %v37_v1  ;;  %v295_v7 = vmov 0   ;;  %vm86_vm2 = vcmask 64512   ;;  %vm137_vm7 = vcmask 7168   ;;  %s297_s10 = smov [#allocation6]  }
  0x15   :  { %v35_v5 = vmul.f32 14.285714, %v34_v2  ;;  %213 = vset.pattern.permute.xlu0 %v295_v7  ;;  %v99_v13 = vld [vmem:[%s381_s2] sm:$0xff]  ;;  %v93_v18 = vshrl.u32 %v92_v17, 7  ;;  %v97_v19 = vand.u32 127, %v92_v17  ;;  %s296_s2 = smov [#allocation5]  }
  0x16   :  { %v44_v4 = vsel %vm39_vm1, %v38_v3, 0  ;;  %v193_v20 = vld [vmem:[%s382_s3] ss:$0 sm:$0xff]  ;;  %s169_s3 = sshll.u32 %s296_s2, 4  ;;  %vm149_vm8 = vcmask 0   ;;  %s179_s11 = sshll.u32 %s297_s10, 4  ;;  %s170_s3 = int_to_ptr.vmem [resolvable:$true] %s169_s3  ;;  %s180_s11 = int_to_ptr.vmem [resolvable:$true] %s179_s11 }
  0x17   :  { %198 = vmatpush3.bf16.xpose.msra.mxu0 %v44_v4  ;;  %v36_v6 = vpack.c.bf16 %v35_v5, %v35_v5  ;;  %vm98_vm3 = vcmp.ne.s32.totalorder %v93_v18, %v97_v19  ;;  %s242_s12 = scalar_lea.vmem %s170_s3, 16  ;;  %s246_s13 = scalar_lea.vmem %s170_s3, 32 }
  0x18   :  { %p243_p8 = scmp.ne.s32.totalorder %s170_s3, %s242_s12  ;;  %p247_p9 = scmp.lt.s32.totalorder %s170_s3, %s170_s3 }
  0x19   :  { %p248_p10 = scmp.lt.s32.totalorder %s246_s13, %s242_s12 }
  0x1b   :  { %p249_p11 = por %p248_p10, %p247_p9 }
  0x1d   :  { %p250_p12 = pnand %p249_p11, %p243_p8 }
  0x1e   :  { %200 = vmatmul.mubr.msk.bf16.vlgmr.msra.gmra.mrb[0].mxu0 %vm39_vm1, %v36_v6 }
  0xf1   :  { %v80_v8 = vpop.f32.mrb[0].mxu0 }
  0xf2   :  { %v201_v9 = vpop.f32.mrb[1].mxu0  ;;  %v87_v10 = vsel %vm86_vm2, %v80_v8, -inf }
  0xf3   :  { %88 = vmax.xlane.f32.xlu0 %v87_v10  ;;  %v83_v11 = vpop.f32.mrb[2].mxu0 }
  0xf4   :  { %v202_v12 = vpop.f32.mrb[3].mxu0 }
 0x109   :  { %102 = vperm.xlu0 %213, %v99_v13  }
 0x180   :  { %v89_v14 = vpop.xlane.xlu0 %88 }
 0x181   :  { %v90_v15 = vsub.f32 %v80_v8, %v89_v14 }
 0x183   :  { %v110_v16 = vmul.f32 1.442695, %v90_v15 }
 0x185   :  { %214 = vpow2.f32 %v110_v16 }
 0x188   :  { %v103_v21 = vpop.permute.xlu0 %102 }
 0x189   :  { %vm108_vm4 = vcmp.eq.s32.totalorder %v103_v21, %v193_v20 }
 0x18a   :  { %vm109_vm5 = vmand %vm108_vm4, %vm98_vm3 }
 0x18b   :  { %v118_v24 = vsel %vm109_vm5, 1.0, %v293_v0  ;;  %v122_v27 = vsel %vm109_vm5, %v90_v15, 0.0 }
 0x18c   :  { %v119_v26 = vsel %vm86_vm2, %v118_v24, 0.0  ;;  %v123_v28 = vsel %vm86_vm2, %v122_v27, 0.0 }
 0x18f   :  { %v215_v22 = vpop.eup %214 }
 0x190   :  { %v112_v23 = vsel %vm98_vm3, %v215_v22, 0.0 }
 0x191   :  { %v113_v25 = vsel %vm86_vm2, %v112_v23, 0.0 }
 0x192   :  { %114 = vadd.xlane.f32.xlu1 %v113_v25 }
 0x196   :  { %120 = vadd.xlane.f32.xlu1 %v119_v26 }
 0x19a   :  { %124 = vadd.xlane.f32.xlu1 %v123_v28 }
 0x21f   :  { %v115_v29 = vpop.xlane.xlu1 %114 }
 0x220   :  { %216 = vlog2.f32 %v115_v29 }
 0x223   :  { %v121_v30 = vpop.xlane.xlu1 %120 }
 0x224   :  { %vm126_vm6 = vcmp.eq.f32.partialorder %v121_v30, 0.0 }
 0x225   :  { %v194_v31 = vsel %vm126_vm6, 1.0, %v293_v0 }
 0x226   :  { %v131_v32 = vadd.f32 %v194_v31, %v121_v30  ;;  %v135_v41 = vsub.f32 1.0, %v194_v31  ;;  %v151_v44 = vsel %vm137_vm7, %v194_v31, 0.0 }
 0x227   :  { %v125_v36 = vpop.xlane.xlu1 %124 }
 0x228   :  { %218 = vrcp.f32 %v131_v32 }
 0x22a   :  { %v217_v33 = vpop.eup %216 }
 0x22b   :  { %v117_v34 = vmul.f32 0.6931472, %v217_v33 }
 0x22d   :  { %v129_v35 = vmul.f32 %v121_v30, %v117_v34 }
 0x22f   :  { %v130_v37 = vsub.f32 %v125_v36, %v129_v35 }
 0x232   :  { %v219_v38 = vpop.eup %218 }
 0x233   :  { %v133_v39 = vmul.f32 %v219_v38, %v130_v37 }
 0x235   :  { %v134_v40 = vsub.f32 0.0, %v133_v39 }
 0x237   :  { %v136_v42 = vmul.f32 %v135_v41, %v134_v40 }
 0x239   :  { %v138_v43 = vsel %vm137_vm7, %v136_v42, 0.0 }
 0x23a   :  { %139 = vadd.xlane.f32.xlu1 %v138_v43 }
 0x23e   :  { %152 = vadd.xlane.f32.xlu1 %v151_v44 }
 0x2c7   :  { %v140_v45 = vpop.xlane.xlu1 %139 }
 0x2c8   :  { %v141_v46 = vrot.slane %v140_v45, 4 }
 0x2ca   :  { %v142_v47 = vadd.f32 %v141_v46, %v140_v45 }
 0x2cb   :  { %v153_v48 = vpop.xlane.xlu1 %152 }
 0x2cc   :  { %v143_v49 = vrot.slane %v142_v47, 2  ;;  %v154_v50 = vrot.slane %v153_v48, 4 }
 0x2ce   :  { %v155_v51 = vadd.f32 %v154_v50, %v153_v48  ;;  %v144_v52 = vadd.f32 %v143_v49, %v142_v47 }
 0x2d0   :  { %v156_v53 = vrot.slane %v155_v51, 2  ;;  %v145_v54 = vrot.slane %v144_v52, 1 }
 0x2d2   :  { %v157_v55 = vadd.f32 %v156_v53, %v155_v51  ;;  %v146_v56 = vadd.f32 %v145_v54, %v144_v52 }
 0x2d4   :  { %203 = vpush %v146_v56  ;;  %v158_v57 = vrot.slane %v157_v55, 1 }
 0x2d6   :  { %v159_v58 = vadd.f32 %v158_v57, %v157_v55 }
 0x2d8   :  { %205 = vpush %v159_v58 }
 0x305   :  { %s204_s9 = spop %203 }
 0x306   :  { %v148_v59 = vstv %s204_s9 }
 0x307   :  { %150 = vst.msk [vmem:[#allocation5] sm:$0x1] %vm149_vm8, %v148_v59 }
 0x308   :  { %253 = shalt.err (!%p250_p12)
}
 0x309   :  { %s254_s16 = scalar_lea.hbm %s383_s4, 16 }
 0x30a   :  { %p255_p13 = scmp.ne.s32.totalorder %s383_s4, %s254_s16  ;;  %p258_p0 = scmp.lt.u32.totalorder %s254_s16, %s383_s4 }
 0x30c   :  { %p260_p1 = pnand %p258_p0, %p255_p13 }
 0x30e   :  { %263 = shalt.err (!%p260_p1)
}
 0x30f   :  { %172 = dma.vmem_to_hbm [thread:$0]  %s170_s3, 16, %s383_s4, [#allocation4]  }
 0x310   :  { %s206_s23 = spop %205  ;;  %s264_s24 = scalar_lea.vmem %s180_s11, 16 }
 0x311   :  { %v161_v60 = vstv %s206_s23  ;;  %p265_p2 = scmp.ne.s32.totalorder %s180_s11, %s264_s24  ;;  %s268_s25 = scalar_lea.vmem %s180_s11, 32 }
 0x312   :  { %162 = vst.msk [vmem:[#allocation6] sm:$0x1] %vm149_vm8, %v161_v60  ;;  %p269_p3 = scmp.lt.s32.totalorder %s180_s11, %s180_s11  ;;  %p270_p4 = scmp.lt.s32.totalorder %s268_s25, %s264_s24 }
 0x314   :  { %p271_p5 = por %p270_p4, %p269_p3 }
 0x316   :  { %p272_p6 = pnand %p271_p5, %p265_p2 }
 0x318   :  { %275 = shalt.err (!%p272_p6)
}
 0x319   :  { %s276_s28 = scalar_lea.hbm %s384_s5, 16 }
 0x31a   :  { %p277_p7 = scmp.ne.s32.totalorder %s384_s5, %s276_s28  ;;  %p280_p8 = scmp.lt.u32.totalorder %s276_s28, %s384_s5 }
 0x31c   :  { %p282_p9 = pnand %p280_p8, %p277_p7 }
 0x31e   :  { %285 = shalt.err (!%p282_p9)
}
 0x31f   :  { %182 = dma.vmem_to_hbm [thread:$0]  %s180_s11, 16, %s384_s5, [#allocation7]  }
 0x320   :  { %288 = dma.done.wait [#allocation4], 16  }
 0x321   :  { %289 = vsyncadd [#allocation4], 4294967280 }
 0x322   :  { %290 = dma.done.wait [#allocation7], 16  }
 0x323   :  { %291 = vsyncadd [#allocation7], 4294967280 }
 0x324   :  { %189 = vsyncpa [#allocation3], 1 }
 0x325   :  { %190 = vsyncpa [#allocation4], 1 }
 0x326   :  { %191 = vsyncpa [#allocation7], 1 }

</bundles_post_ra>
